<compile_context>
chip_gen: v6e
topology: v6e:2x2x1
jax: 0.10.0
libtpu: 0.0.40
codegen_flags: <defaults>
</compile_context>

<pallas_src>
import functools

import jax
import jax.numpy as jnp
from jax.experimental import pallas as pl
from jax.experimental.pallas import tpu as pltpu


# ----------------------------- kernel ----------------------------------------

def block_stack_kernel(x_ref, w1_ref, b1_ref, w2_ref, b2_ref, o_ref):
    """One residual Block applied to the resident activation.

    x_ref : (tb, D)      input batch tile (read only at layer 0)
    w1_ref: (1, D, D)    fc1 weight (pre-transposed, in x out) for this layer
    b1_ref: (1, 1, D)    fc1 bias
    w2_ref: (1, D, D)    fc2 weight (pre-transposed)
    b2_ref: (1, 1, D)    fc2 bias
    o_ref : (tb, D)      running activation; same block across the layer axis,
                         so it lives in VMEM for the whole stack.
    """
    layer = pl.program_id(1)

    @pl.when(layer == 0)
    def _():
        o_ref[...] = x_ref[...]

    x = o_ref[...]                                              # (tb, D)
    h = jnp.dot(x, w1_ref[0], preferred_element_type=jnp.float32) + b1_ref[0]
    h = jnp.maximum(h, 0.0)                                     # ReLU
    y = jnp.dot(h, w2_ref[0], preferred_element_type=jnp.float32) + b2_ref[0]
    o_ref[...] = y + x                                          # residual add


# ----------------------------- wrapper ----------------------------------------

def discriminator_forward(x, w1, b1, w2, b2, *, tile_b=8):
    """x: (B, D) f32; w1/w2: (L, D, D); b1/b2: (L, 1, D). Returns (B, D)."""
    B, D = x.shape
    L = w1.shape[0]
    assert D % 128 == 0, "block_dim must be a multiple of 128 for lane density"

    # pad batch to a multiple of the batch tile
    pad = (-B) % tile_b
    if pad:
        x = jnp.pad(x, ((0, pad), (0, 0)))
    Bp = B + pad

    out = pl.pallas_call(
        block_stack_kernel,
        out_shape=jax.ShapeDtypeStruct((Bp, D), jnp.float32),
        grid_spec=pltpu.PrefetchScalarGridSpec(
            num_scalar_prefetch=0,
            grid=(Bp // tile_b, L),
            in_specs=[
                pl.BlockSpec((tile_b, D), lambda i, l: (i, 0)),    # x
                pl.BlockSpec((1, D, D), lambda i, l: (l, 0, 0)),   # w1[l]
                pl.BlockSpec((1, 1, D), lambda i, l: (l, 0, 0)),   # b1[l]
                pl.BlockSpec((1, D, D), lambda i, l: (l, 0, 0)),   # w2[l]
                pl.BlockSpec((1, 1, D), lambda i, l: (l, 0, 0)),   # b2[l]
            ],
            out_specs=pl.BlockSpec((tile_b, D), lambda i, l: (i, 0)),
        ),
        compiler_params=pltpu.CompilerParams(
            dimension_semantics=("parallel", "arbitrary")),
    )(x, w1, b1, w2, b2)

    return out[:B] if pad else out


# ----------------------------- param init ------------------------------------

def init_params(key, *, n_layers, block_dim):
    """PyTorch nn.Linear-style init; weights stored pre-transposed (in, out)."""
    bound = 1.0 / jnp.sqrt(jnp.float32(block_dim))
    ks = jax.random.split(key, 4)

    def uni(k, shape):
        return jax.random.uniform(k, shape, jnp.float32, -bound, bound)

    w1 = uni(ks[0], (n_layers, block_dim, block_dim))
    b1 = uni(ks[1], (n_layers, 1, block_dim))
    w2 = uni(ks[2], (n_layers, block_dim, block_dim))
    b2 = uni(ks[3], (n_layers, 1, block_dim))
    return w1, b1, w2, b2


# ----------------------------- reference (pure JAX) ---------------------------

def discriminator_ref(x, w1, b1, w2, b2):
    y = x
    for l in range(w1.shape[0]):
        h = jnp.maximum(y @ w1[l] + b1[l], 0.0)
        y = h @ w2[l] + b2[l] + y
    return y


# ----------------------------- main -------------------------------------------

if __name__ == "__main__":
    batch = 8
    block_dim = 128
    n_layers = 3

    key = jax.random.PRNGKey(0)
    k_x, k_p = jax.random.split(key)

    x = jax.random.normal(k_x, (batch, block_dim), jnp.float32)
    w1, b1, w2, b2 = init_params(k_p, n_layers=n_layers, block_dim=block_dim)

    fwd = jax.jit(functools.partial(discriminator_forward, tile_b=8))
    out = fwd(x, w1, b1, w2, b2)
    jax.block_until_ready(out)

    assert out.shape == (batch, block_dim)

    ref = discriminator_ref(x, w1, b1, w2, b2)
    assert jnp.allclose(out, ref, atol=2e-3, rtol=2e-3), "mismatch vs reference"

    print("KERNEL_OK")
</pallas_src>

<mosaic_0001>
module attributes {stable_mosaic.version = 11 : i64} {
  func.func @block_stack_kernel(%arg0: i32, %arg1: i32, %arg2: memref<8x128xf32, #tpu.memory_space<vmem>>, %arg3: memref<1x128x128xf32, #tpu.memory_space<vmem>>, %arg4: memref<1x1x128xf32, #tpu.memory_space<vmem>>, %arg5: memref<1x128x128xf32, #tpu.memory_space<vmem>>, %arg6: memref<1x1x128xf32, #tpu.memory_space<vmem>>, %arg7: memref<8x128xf32, #tpu.memory_space<vmem>>) attributes {dimension_semantics = [#tpu.dimension_semantics<parallel>, #tpu.dimension_semantics<arbitrary>], iteration_bounds = array<i64: 1, 3>, scalar_prefetch = 0 : i64, scratch_operands = 0 : i64, tpu.core_type = #tpu.core_type<tc>, window_params = [{transform_indices = @transform_0, window_bounds = array<i64: 8, 128>}, {transform_indices = @transform_1, window_bounds = array<i64: 1, 128, 128>}, {transform_indices = @transform_2, window_bounds = array<i64: 1, 1, 128>}, {transform_indices = @transform_3, window_bounds = array<i64: 1, 128, 128>}, {transform_indices = @transform_4, window_bounds = array<i64: 1, 1, 128>}, {transform_indices = @transform_5, window_bounds = array<i64: 8, 128>}]} {
    %c0_i32 = arith.constant 0 : i32
    %0 = arith.cmpi eq, %arg1, %c0_i32 : i32
    %1 = arith.extui %0 : i1 to i32
    %c0_i32_0 = arith.constant 0 : i32
    %2 = arith.cmpi ne, %1, %c0_i32_0 : i32
    scf.if %2 {
      %c0_18 = arith.constant 0 : index
      %c0_19 = arith.constant 0 : index
      %22 = vector.load %arg2[%c0_18, %c0_19] : memref<8x128xf32, #tpu.memory_space<vmem>>, vector<8x128xf32>
      %c0_20 = arith.constant 0 : index
      %c0_21 = arith.constant 0 : index
      %23 = vector.load %arg7[%c0_20, %c0_21] : memref<8x128xf32, #tpu.memory_space<vmem>>, vector<8x128xf32>
      tpu.vector_store %arg7[%c0_20, %c0_21], %22 {strides = array<i32>} : memref<8x128xf32, #tpu.memory_space<vmem>>, vector<8x128xf32>,
    } else {
    }
    %c0 = arith.constant 0 : index
    %c0_1 = arith.constant 0 : index
    %3 = vector.load %arg7[%c0, %c0_1] : memref<8x128xf32, #tpu.memory_space<vmem>>, vector<8x128xf32>
    %c0_2 = arith.constant 0 : index
    %c0_3 = arith.constant 0 : index
    %c0_4 = arith.constant 0 : index
    %4 = vector.load %arg3[%c0_2, %c0_3, %c0_4] : memref<1x128x128xf32, #tpu.memory_space<vmem>>, vector<1x128x128xf32>
    %5 = vector.shape_cast %4 : vector<1x128x128xf32> to vector<128x128xf32>
    %cst = arith.constant dense<0.000000e+00> : vector<8x128xf32>
    %6 = tpu.matmul %3, %5, %cst {dimension_numbers = #tpu.dot_dimension_numbers<[1], [0], [0], [1], [0, 0, 1, 1], [], []>} : vector<8x128xf32>, vector<128x128xf32>, vector<8x128xf32> -> vector<8x128xf32>
    %c0_5 = arith.constant 0 : index
    %c0_6 = arith.constant 0 : index
    %c0_7 = arith.constant 0 : index
    %7 = vector.load %arg4[%c0_5, %c0_6, %c0_7] : memref<1x1x128xf32, #tpu.memory_space<vmem>>, vector<1x1x128xf32>
    %8 = vector.shape_cast %7 : vector<1x1x128xf32> to vector<1x128xf32>
    %9 = vector.broadcast %8 : vector<1x128xf32> to vector<8x128xf32>
    %10 = arith.addf %6, %9 : vector<8x128xf32>
    %cst_8 = arith.constant 0.000000e+00 : f32
    %11 = vector.broadcast %cst_8 : f32 to vector<8x128xf32>
    %12 = arith.maximumf %10, %11 : vector<8x128xf32>
    %c0_9 = arith.constant 0 : index
    %c0_10 = arith.constant 0 : index
    %c0_11 = arith.constant 0 : index
    %13 = vector.load %arg5[%c0_9, %c0_10, %c0_11] : memref<1x128x128xf32, #tpu.memory_space<vmem>>, vector<1x128x128xf32>
    %14 = vector.shape_cast %13 : vector<1x128x128xf32> to vector<128x128xf32>
    %cst_12 = arith.constant dense<0.000000e+00> : vector<8x128xf32>
    %15 = tpu.matmul %12, %14, %cst_12 {dimension_numbers = #tpu.dot_dimension_numbers<[1], [0], [0], [1], [0, 0, 1, 1], [], []>} : vector<8x128xf32>, vector<128x128xf32>, vector<8x128xf32> -> vector<8x128xf32>
    %c0_13 = arith.constant 0 : index
    %c0_14 = arith.constant 0 : index
    %c0_15 = arith.constant 0 : index
    %16 = vector.load %arg6[%c0_13, %c0_14, %c0_15] : memref<1x1x128xf32, #tpu.memory_space<vmem>>, vector<1x1x128xf32>
    %17 = vector.shape_cast %16 : vector<1x1x128xf32> to vector<1x128xf32>
    %18 = vector.broadcast %17 : vector<1x128xf32> to vector<8x128xf32>
    %19 = arith.addf %15, %18 : vector<8x128xf32>
    %20 = arith.addf %19, %3 : vector<8x128xf32>
    %c0_16 = arith.constant 0 : index
    %c0_17 = arith.constant 0 : index
    %21 = vector.load %arg7[%c0_16, %c0_17] : memref<8x128xf32, #tpu.memory_space<vmem>>, vector<8x128xf32>
    tpu.vector_store %arg7[%c0_16, %c0_17], %20 {strides = array<i32>} : memref<8x128xf32, #tpu.memory_space<vmem>>, vector<8x128xf32>,
    return
  }
  func.func @transform_0(%arg0: i32, %arg1: i32) -> (i32, i32) {
    %c0_i32 = arith.constant 0 : i32
    %c0_i32_0 = arith.constant 0 : i32
    return %arg0, %c0_i32 : i32, i32
  }
  func.func @transform_1(%arg0: i32, %arg1: i32) -> (i32, i32, i32) {
    %c0_i32 = arith.constant 0 : i32
    %c0_i32_0 = arith.constant 0 : i32
    %c0_i32_1 = arith.constant 0 : i32
    return %arg1, %c0_i32, %c0_i32_0 : i32, i32, i32
  }
  func.func @transform_2(%arg0: i32, %arg1: i32) -> (i32, i32, i32) {
    %c0_i32 = arith.constant 0 : i32
    %c0_i32_0 = arith.constant 0 : i32
    %c0_i32_1 = arith.constant 0 : i32
    return %arg1, %c0_i32, %c0_i32_0 : i32, i32, i32
  }
  func.func @transform_3(%arg0: i32, %arg1: i32) -> (i32, i32, i32) {
    %c0_i32 = arith.constant 0 : i32
    %c0_i32_0 = arith.constant 0 : i32
    %c0_i32_1 = arith.constant 0 : i32
    return %arg1, %c0_i32, %c0_i32_0 : i32, i32, i32
  }
  func.func @transform_4(%arg0: i32, %arg1: i32) -> (i32, i32, i32) {
    %c0_i32 = arith.constant 0 : i32
    %c0_i32_0 = arith.constant 0 : i32
    %c0_i32_1 = arith.constant 0 : i32
    return %arg1, %c0_i32, %c0_i32_0 : i32, i32, i32
  }
  func.func @transform_5(%arg0: i32, %arg1: i32) -> (i32, i32) {
    %c0_i32 = arith.constant 0 : i32
    %c0_i32_0 = arith.constant 0 : i32
    return %arg0, %c0_i32 : i32, i32
  }
}

</mosaic_0001>

<bundles_post_ra>
// kernel: discriminator_forward.1
= control target key start
LH: loop header
LB: loop body
LE: loop exit
PB: predicated region body
PF: predicated region fallthrough
CT: control target
= control target key end

     0   :  { %10 = vsyncpa [#allocation3], 0  ;;  %s1312_s0 = inlined_call_operand.hbm [shape: f32[8,128], index: 0, kind: input, shape index: {}]   ;;  %s1313_s1 = inlined_call_operand.hbm [shape: f32[3,128,128], index: 1, kind: input, shape index: {}]   ;;  %s1314_s2 = inlined_call_operand.vmem [shape: f32[3,1,128], index: 2, kind: input, shape index: {}]   ;;  %s1315_s3 = inlined_call_operand.hbm [shape: f32[3,128,128], index: 3, kind: input, shape index: {}]   ;;  %s1316_s4 = inlined_call_operand.vmem [shape: f32[3,1,128], index: 4, kind: input, shape index: {}]   ;;  %s1317_s5 = inlined_call_operand.hbm [shape: f32[8,128], index: 5, kind: output, shape index: {}]  }
   0x1   :  { %11 = vsyncpa [#allocation6], 0 }
   0x2   :  { %13 = vsyncpa [#allocation6 + $0x1], 0 }
   0x3   :  { %14 = vsyncpa [#allocation4], 0  ;;  %s1064_s18 = smov 0   ;;  %s1066_s19 = smov 0  }
   0x4   :  { %s1068_s20 = smov 0   ;;  %s1070_s21 = smov 0  }
   0x5   :  { %s1072_s22 = smov 0   ;;  %s1074_s23 = smov 0  }
   0x6 LB: > { %s29_s24 = sadd.s32 1, %s1020_s22  ;;  %s65_s25 = sadd.s32 1, %s1012_s20  ;;  %s1024_s23 = sphi %s1074_s23, %s20_s23   ;;  %s1020_s22 = sphi %s1072_s22, %s1325_s22   ;;  %s1016_s21 = sphi %s1070_s21, %s1324_s21   ;;  %s1012_s20 = sphi %s1068_s20, %s1323_s20   ;;  %s1008_s19 = sphi %s1066_s19, %s1322_s19   ;;  %s1004_s18 = sphi %s1064_s18, %s1321_s18  }
   0x7   : > { %p30_p0 = scmp.ge.s32.totalorder %s29_s24, 3  ;;  %p72_p1 = scmp.ne.s32.totalorder %s1012_s20, %s1008_s19 }
   0x8   : > { %p73_p2 = scmp.eq.s32.totalorder %s1024_s23, 0  ;;  %p802_p4 = scmp.lt.s32.totalorder %s1024_s23, 3 }
   0x9   : > { %s1327_s24 = smov (%p30_p0, %s29_s24), 0  ;;  %s219_s27 = sand.u32 1, %s1024_s23  }
   0xa   : > { %p74_p3 = por %p73_p2, %p72_p1  ;;  %s62_s26 = ssub.s32 %s1020_s22, %s1327_s24 }
   0xb   : > { %p63_p5 = scmp.eq.s32.totalorder %s62_s26, 0  ;;  %s221_s28 = sand.u32 1, %s1012_s20  }
   0xc   : > { %s672_s29 = sshll.u32 %s1020_s22, 11  ;;  %s655_s6 = sshll.u32 %s221_s28, 7 }
   0xd   : > { %s1108_s30 = scalar_select %p63_p5, %s1012_s20, %s65_s25  }
   0xe   : > { %s229_s9 = scalar_lea.hbm %s1313_s1, %s672_s29  ;;  %p1115_p6 = pnand %p802_p4, %p74_p3 }
   0xf   : > { %s223_s11 = scalar_lea.vmem [#allocation5], %s655_s6  ;;  %s1119_s13 = scalar_lea.sflag [#allocation6], %s219_s27 }
  0x10   : > { %s230_s12 = sshll.u32 %s223_s11, 4  ;;  %p862_p7 = pneg %p1115_p6  ;;  %s231_s12 = int_to_ptr.vmem [resolvable:$true] %s230_s12 }
  0x11   : > { %s873_s14 = scalar_lea.vmem %s231_s12, 2048  ;;  %s1026_s15 = smov [#allocation5]  }
  0x12   : > { %p874_p8 = scmp.ne.s32.totalorder %s231_s12, %s873_s14  ;;  %s878_s16 = sshll.u32 %s1026_s15, 4  ;;  %s879_s16 = int_to_ptr.vmem [resolvable:$false] %s878_s16 }
  0x13   : > { %s880_s17 = scalar_lea.vmem %s879_s16, 4096  ;;  %p881_p11 = scmp.lt.s32.totalorder %s231_s12, %s879_s16 }
  0x14   : > { %p876_p9 = pnand %p874_p8, %p862_p7  ;;  %p882_p12 = scmp.lt.s32.totalorder %s880_s17, %s873_s14 }
  0x16   : > { %p877_p10 = pneg %p876_p9  ;;  %p883_p13 = por %p882_p12, %p881_p11 }
  0x18   : > { %p884_p0 = pnand %p883_p13, %p877_p10 }
  0x1a   : > { %887 = shalt.err (!%p884_p0)
}
  0x1b   : > { %s1027_s25 = smov 128   ;;  %s1028_s26 = smov 8  }
  0x1c   : > { %797 = dma.hbm_to_vmem [thread:$0]  (!%p1115_p6), %s229_s9, 2048, %s231_s12, %s1119_s13, %s1027_s25, %s1027_s25, %s1028_s26  }
  0x1d   : > { %s1137_s7 = scalar_lea.hbm %s1315_s3, %s672_s29  ;;  %s250_s8 = scalar_lea.vmem [#allocation7], %s655_s6 }
  0x1e   : > { %s257_s11 = sshll.u32 %s250_s8, 4  ;;  %s1140_s14 = sadd.s32 4294967295, %s1024_s23   ;;  %s258_s11 = int_to_ptr.vmem [resolvable:$true] %s257_s11 }
  0x1f   : > { %p78_p1 = scmp.ne.s32.totalorder %s1008_s19, %s1004_s18  ;;  %p79_p2 = scmp.eq.s32.totalorder %s1140_s14, 0 }
  0x20   : > { %p652_p3 = scmp.ge.s32.totalorder %s1024_s23, 1  ;;  %p193_p4 = scmp.lt.s32.totalorder %s1024_s23, 4 }
  0x21   : > { %p1149_p5 = por %p79_p2, %p78_p1  ;;  %s1029_s6 = smov [#allocation2]  }
  0x22   : > { %p1153_p8 = pnand %p652_p3, %p193_p4  ;;  %s208_s12 = sshll.u32 %s1029_s6, 4  ;;  %s209_s12 = int_to_ptr.vmem [resolvable:$true] %s208_s12 }
  0x23   : > { %s901_s15 = scalar_lea.vmem %s258_s11, 2048  ;;  %s1030_s18 = smov [#allocation7]  }
  0x24   : > { %p790_p9 = pneg %p1153_p8  ;;  %p902_p10 = scmp.ne.s32.totalorder %s258_s11, %s901_s15 }
  0x25   : > { %s906_s16 = sshll.u32 %s1030_s18, 4  ;;  %s907_s16 = int_to_ptr.vmem [resolvable:$false] %s906_s16 }
  0x26   : > { %p904_p11 = pnand %p902_p10, %p862_p7  ;;  %s908_s17 = scalar_lea.vmem %s907_s16, 4096 }
  0x27   : > { %p909_p13 = scmp.lt.s32.totalorder %s258_s11, %s907_s16  ;;  %p910_p0 = scmp.lt.s32.totalorder %s908_s17, %s901_s15 }
  0x28   : > { %p905_p12 = pneg %p904_p11 }
  0x29   : > { %p911_p1 = por %p910_p0, %p909_p13 }
  0x2b   : > { %p912_p3 = pnand %p911_p1, %p905_p12 }
  0x2d   : > { %915 = shalt.err (!%p912_p3)
}
  0x2e   : > { %800 = dma.hbm_to_vmem [thread:$0]  (!%p1115_p6), %s1137_s7, 2048, %s258_s11, %s1119_s13, %s1027_s25, %s1027_s25, %s1028_s26  }
  0x2f   : > { %p791_p7 = pnand %p790_p9, %p79_p2  ;;  %s927_s27 = scalar_lea.vmem %s209_s12, 128 }
  0x30   : > { %p928_p10 = scmp.ne.s32.totalorder %s209_s12, %s927_s27  ;;  %p935_p13 = scmp.lt.s32.totalorder %s209_s12, %s209_s12 }
  0x31   : > { %p918_p4 = pneg %p791_p7  ;;  %p936_p0 = scmp.lt.s32.totalorder %s927_s27, %s927_s27 }
  0x33   : > { %p930_p11 = pnand %p928_p10, %p918_p4  ;;  %p937_p1 = por %p936_p0, %p935_p13 }
  0x35   : > { %p931_p12 = pneg %p930_p11 }
  0x37   : > { %p938_p3 = pnand %p937_p1, %p931_p12 }
  0x39   : > { %941 = shalt.err (!%p938_p3)
}
  0x3a   : > { %793 = dma.hbm_to_vmem [thread:$0]  (!%p791_p7), %s1312_s0, 128, %s209_s12, [#allocation3]  }
  0x3b   : > { %275 = sbr.rel (%p1153_p8) target bundleno = 511 (0x1ff), region = 40 }
  0x40   : > { %991 = dma.done.wait (%p79_p2), [#allocation3], 128  }
  0x41   : > { %993 = vsyncadd (%p79_p2), [#allocation3], 4294967168  ;;  %s281_s13 = sand.u32 1, %s1140_s14   ;;  %s283_s25 = sand.u32 1, %s1008_s19  }
  0x42   : > { %s663_s26 = sshll.u32 %s283_s25, 7  ;;  %s282_s7 = scalar_lea.sflag [#allocation6], %s281_s13 }
  0x43   : > { %s1185_s8 = scalar_lea.vmem [#allocation5], %s663_s26 }
  0x44   : > { %995 = dma.done.wait (%p1149_p5), %s282_s7, 4096  }
  0x45   : > { %997 = vsyncadd (%p1149_p5), %s282_s7, 4294963200  ;;  %p327_p6 = scmp.lt.s32.totalorder %s1016_s21, 2  ;;  %s1203_s17 = scalar_lea.vmem [#allocation7], %s663_s26 }
  0x46   : > { %p665_p2 = scmp.ne.s32.totalorder %s1016_s21, 0 }
  0x47   : > { %s1193_s11 = scalar_select %p327_p6, %s1016_s21, 2 }
  0x48   : > { %336 = sbr.rel (%p665_p2) target bundleno = 79 (0x4f), region = 56 }
  0x49   : > { %s329_s12 = scalar_lea.vmem %s1314_s2, %s1193_s11  ;;  %s332_s16 = scalar_lea.vmem %s1316_s4, %s1193_s11 }
  0x4d   : > { %v337_v0 = vld [vmem:[#allocation2] sm:$0xff] }
  0x4e   : > { %338 = vst [vmem:[#allocation8] sm:$0xff] %v337_v0 }
  0x4f PF: > { %v355_v1 = vld [vmem:[%s1185_s8 + $0x78] sm:$0xff]  ;;  %v1031_v2 = vmov 0.0   ;;  %v354_v3 = vld [vmem:[%s1185_s8 + $0x70] sm:$0xff]  ;;  %vm1032_vm0 = vmmov 0   ;;  %v353_v4 = vld [vmem:[%s1185_s8 + $0x68] sm:$0xff]  ;;  %s1033_s28 = smov [#allocation8]  }
  0x50   : > { %708 = vmatprep.subr.mxu0 %v1031_v2  ;;  %740 = vmatprep.mubr.msk.f32.mxu0 %vm1032_vm0, %v1031_v2  ;;  %v352_v5 = vld [vmem:[%s1185_s8 + $0x60] sm:$0xff]  ;;  %v449_v6 = vld [vmem:[%s1203_s17 + $0x78] sm:$0xff]  ;;  %v448_v7 = vld [vmem:[%s1203_s17 + $0x70] sm:$0xff]  ;;  %s538_s13 = sshll.u32 %s1033_s28, 4  ;;  %p804_p5 = scmp.eq.s32.totalorder %s1140_s14, 2  ;;  %s539_s13 = int_to_ptr.vmem [resolvable:$true] %s538_s13 }
  0x51   : > { %709 = vmatpush3.msra.mxu0 %v355_v1  ;;  %743 = vmatprep.subr.mxu1 %v1031_v2  ;;  %v351_v8 = vld [vmem:[%s1185_s8 + $0x58] sm:$0xff]  ;;  %v447_v9 = vld [vmem:[%s1203_s17 + $0x68] sm:$0xff]  ;;  %v350_v10 = vld [vmem:[%s1185_s8 + $0x50] sm:$0xff]  ;;  %s942_s25 = scalar_lea.vmem %s539_s13, 128  ;;  %p949_p4 = scmp.lt.s32.totalorder %s539_s13, %s539_s13 }
  0x52   : > { %710 = vmatprep.subr.mxu0 %v1031_v2  ;;  %775 = vmatprep.mubr.msk.f32.mxu1 %vm1032_vm0, %v1031_v2  ;;  %v446_v11 = vld [vmem:[%s1203_s17 + $0x60] sm:$0xff]  ;;  %v349_v12 = vld [vmem:[%s1185_s8 + $0x48] sm:$0xff]  ;;  %v445_v13 = vld [vmem:[%s1203_s17 + $0x58] sm:$0xff]  ;;  %p943_p8 = scmp.ne.s32.totalorder %s539_s13, %s942_s25  ;;  %p950_p10 = scmp.lt.s32.totalorder %s942_s25, %s942_s25 }
  0x53   : > { %711 = vmatpush3.msra.mxu0 %v354_v3  ;;  %744 = vmatpush3.msra.mxu1 %v449_v6  ;;  %v348_v14 = vld [vmem:[%s1185_s8 + $0x40] sm:$0xff]  ;;  %v444_v15 = vld [vmem:[%s1203_s17 + $0x50] sm:$0xff]  ;;  %v347_v16 = vld [vmem:[%s1185_s8 + $0x38] sm:$0xff] }
  0x54   : > { %712 = vmatprep.subr.mxu0 %v1031_v2  ;;  %745 = vmatprep.subr.mxu1 %v1031_v2  ;;  %v443_v17 = vld [vmem:[%s1203_s17 + $0x48] sm:$0xff]  ;;  %v346_v18 = vld [vmem:[%s1185_s8 + $0x30] sm:$0xff]  ;;  %v442_v19 = vld [vmem:[%s1203_s17 + $0x40] sm:$0xff]  ;;  %p944_p9 = pnand %p943_p8, %p804_p5  ;;  %p951_p11 = por %p950_p10, %p949_p4 }
  0x55   : > { %713 = vmatpush3.msra.mxu0 %v353_v4  ;;  %746 = vmatpush3.msra.mxu1 %v448_v7  ;;  %v345_v20 = vld [vmem:[%s1185_s8 + $0x28] sm:$0xff]  ;;  %v441_v21 = vld [vmem:[%s1203_s17 + $0x38] sm:$0xff]  ;;  %v344_v22 = vld [vmem:[%s1185_s8 + $0x20] sm:$0xff] }
  0x56   : > { %714 = vmatprep.subr.mxu0 %v1031_v2  ;;  %747 = vmatprep.subr.mxu1 %v1031_v2  ;;  %v440_v23 = vld [vmem:[%s1203_s17 + $0x30] sm:$0xff]  ;;  %v343_v24 = vld [vmem:[%s1185_s8 + $0x18] sm:$0xff]  ;;  %v439_v25 = vld [vmem:[%s1203_s17 + $0x28] sm:$0xff]  ;;  %p945_p7 = pneg %p944_p9 }
  0x57   : > { %715 = vmatpush3.msra.mxu0 %v352_v5  ;;  %748 = vmatpush3.msra.mxu1 %v447_v9  ;;  %v342_v26 = vld [vmem:[%s1185_s8 + $0x10] sm:$0xff]  ;;  %v438_v27 = vld [vmem:[%s1203_s17 + $0x20] sm:$0xff]  ;;  %v341_v28 = vld [vmem:[%s1185_s8 + $0x8] sm:$0xff] }
  0x58   : > { %716 = vmatprep.subr.mxu0 %v1031_v2  ;;  %749 = vmatprep.subr.mxu1 %v1031_v2  ;;  %v437_v29 = vld [vmem:[%s1203_s17 + $0x18] sm:$0xff]  ;;  %v340_v30 = vld [vmem:[%s1185_s8] sm:$0xff]  ;;  %v436_v32 = vld [vmem:[%s1203_s17 + $0x10] sm:$0xff]  ;;  %p952_p12 = pnand %p951_p11, %p945_p7 }
  0x59   : > { %717 = vmatpush3.msra.mxu0 %v351_v8  ;;  %750 = vmatpush3.msra.mxu1 %v446_v11  ;;  %v339_v31 = vld [vmem:[#allocation8] sm:$0xff]  ;;  %v435_v33 = vld [vmem:[%s1203_s17 + $0x8] sm:$0xff]  ;;  %v666_v35 = vld [vmem:[%s329_s12] ss:$0 sm:$0xff] }
  0x5a   : > { %718 = vmatprep.subr.mxu0 %v1031_v2  ;;  %751 = vmatprep.subr.mxu1 %v1031_v2  ;;  %v434_v34 = vld [vmem:[%s1203_s17] sm:$0xff]  ;;  %v667_v40 = vld [vmem:[%s332_s16] ss:$0 sm:$0xff] }
  0x5b   : > { %719 = vmatpush3.msra.mxu0 %v350_v10  ;;  %752 = vmatpush3.msra.mxu1 %v445_v13 }
  0x5c   : > { %720 = vmatprep.subr.mxu0 %v1031_v2  ;;  %753 = vmatprep.subr.mxu1 %v1031_v2 }
  0x5d   : > { %721 = vmatpush3.msra.mxu0 %v349_v12  ;;  %754 = vmatpush3.msra.mxu1 %v444_v15 }
  0x5e   : > { %722 = vmatprep.subr.mxu0 %v1031_v2  ;;  %755 = vmatprep.subr.mxu1 %v1031_v2 }
  0x5f   : > { %723 = vmatpush3.msra.mxu0 %v348_v14  ;;  %756 = vmatpush3.msra.mxu1 %v443_v17 }
  0x60   : > { %724 = vmatprep.subr.mxu0 %v1031_v2  ;;  %757 = vmatprep.subr.mxu1 %v1031_v2 }
  0x61   : > { %725 = vmatpush3.msra.mxu0 %v347_v16  ;;  %758 = vmatpush3.msra.mxu1 %v442_v19 }
  0x62   : > { %726 = vmatprep.subr.mxu0 %v1031_v2  ;;  %759 = vmatprep.subr.mxu1 %v1031_v2 }
  0x63   : > { %727 = vmatpush3.msra.mxu0 %v346_v18  ;;  %760 = vmatpush3.msra.mxu1 %v441_v21 }
  0x64   : > { %728 = vmatprep.subr.mxu0 %v1031_v2  ;;  %761 = vmatprep.subr.mxu1 %v1031_v2 }
  0x65   : > { %729 = vmatpush3.msra.mxu0 %v345_v20  ;;  %762 = vmatpush3.msra.mxu1 %v440_v23 }
  0x66   : > { %730 = vmatprep.subr.mxu0 %v1031_v2  ;;  %763 = vmatprep.subr.mxu1 %v1031_v2 }
  0x67   : > { %731 = vmatpush3.msra.mxu0 %v344_v22  ;;  %764 = vmatpush3.msra.mxu1 %v439_v25 }
  0x68   : > { %732 = vmatprep.subr.mxu0 %v1031_v2  ;;  %765 = vmatprep.subr.mxu1 %v1031_v2 }
  0x69   : > { %733 = vmatpush3.msra.mxu0 %v343_v24  ;;  %766 = vmatpush3.msra.mxu1 %v438_v27 }
  0x6a   : > { %734 = vmatprep.subr.mxu0 %v1031_v2  ;;  %767 = vmatprep.subr.mxu1 %v1031_v2 }
  0x6b   : > { %735 = vmatpush3.msra.mxu0 %v342_v26  ;;  %768 = vmatpush3.msra.mxu1 %v437_v29 }
  0x6c   : > { %736 = vmatprep.subr.mxu0 %v1031_v2  ;;  %769 = vmatprep.subr.mxu1 %v1031_v2 }
  0x6d   : > { %737 = vmatpush3.msra.mxu0 %v341_v28  ;;  %770 = vmatpush3.msra.mxu1 %v436_v32 }
  0x6e   : > { %738 = vmatprep.subr.mxu0 %v1031_v2  ;;  %771 = vmatprep.subr.mxu1 %v1031_v2 }
  0x6f   : > { %739 = vmatpush3.msra.mxu0 %v340_v30  ;;  %772 = vmatpush3.msra.mxu1 %v435_v33 }
  0x70   : > { %741 = vmatmul.mubr.f32.vlgmr.msra.gmra.mxu0 %v339_v31  ;;  %773 = vmatprep.subr.mxu1 %v1031_v2 }
  0x71   : > { %774 = vmatpush3.msra.mxu1 %v434_v34 }
 0x130   : > { %v429_v36 = vpop.f32.mrf.mxu0 }
 0x131   : > { %v430_v37 = vadd.f32 %v666_v35, %v429_v36 }
 0x132   : > { %v742_v38 = vpop.f32.mrf.mxu0 }
 0x133   : > { %v433_v39 = vmax.f32 %v430_v37, 0.0 }
 0x135   : > { %776 = vmatmul.mubr.f32.vlgmr.msra.gmra.mxu1 %v433_v39 }
 0x1f5   : > { %v523_v41 = vpop.f32.mrf.mxu1 }
 0x1f6   : > { %v524_v42 = vadd.f32 %v667_v40, %v523_v41 }
 0x1f7   : > { %v777_v43 = vpop.f32.mrf.mxu1 }
 0x1f8   : > { %v527_v44 = vadd.f32 %v524_v42, %v339_v31 }
 0x1fa   : > { %528 = vst [vmem:[#allocation8] sm:$0xff] %v527_v44 }
 0x1fb   : > { %955 = shalt.err (!%p952_p12)
}
 0x1fc   : > { %787 = dma.vmem_to_hbm [thread:$0]  (%p804_p5), %s539_s13, 128, %s1317_s5, [#allocation4]  }
 0x1fd   : > { %999 = dma.done.wait (%p804_p5), [#allocation4], 128  }
 0x1fe   : > { %1001 = vsyncadd (%p804_p5), [#allocation4], 4294967168 }
 0x1ff PF: > { %s20_s23 = sadd.s32 1, %s1024_s23   ;;  %s1321_s18 = smov %s1008_s19 }
 0x200   : > { %p17_p13 = scmp.ge.s32.totalorder %s20_s23, 5   ;;  %s1322_s19 = smov %s1012_s20 }
 0x201   : > { %s1323_s20 = smov %s1108_s30  ;;  %s1324_s21 = smov %s1020_s22 }
 0x202   : > { %s1325_s22 = smov %s1327_s24  ;;  %19 = sbr.rel (!%p17_p13) target bundleno = 6 (0x6), region = 105 }
 0x207   :  { %551 = vsyncpa [#allocation3], 1 }
 0x208   :  { %553 = vsyncpa [#allocation3 + $0x1], 1 }
 0x209   :  { %554 = vsyncpa [#allocation6], 1 }
 0x20a   :  { %556 = vsyncpa [#allocation6 + $0x1], 1 }
 0x20b   :  { %557 = vsyncpa [#allocation4], 1 }
 0x20c   :  { %559 = vsyncpa [#allocation4 + $0x1], 1 }

</bundles_post_ra>
